<compile_context>
chip_gen: v5e
topology: v5e:2x2
jax: 0.10.0
libtpu: 0.0.40
codegen_flags: <defaults>
</compile_context>

<pallas_src>
import functools

import jax
import jax.numpy as jnp
from jax.experimental import pallas as pl
from jax.experimental.pallas import tpu as pltpu

SELU_ALPHA = 1.6732632423543772848170429916717
SELU_SCALE = 1.0507009873554804934193349852946


def _selu(x):
    # Clamp the exp argument so the unselected branch never overflows.
    return SELU_SCALE * jnp.where(
        x > 0, x, SELU_ALPHA * (jnp.exp(jnp.minimum(x, 0.0)) - 1.0))


def dcu2_kernel(x_ref, taps_ref, w1_ref, w2_ref, vec_ref, out_ref,
                *, K, dilation, cout):
    nb, cin, L = x_ref.shape
    pad = (K - 1) // 2 * dilation

    x = x_ref[...].astype(jnp.float32)                      # (Nb, Cin, L)
    xs = [x[b] for b in range(nb)]                          # static per-batch views

    # Depthwise Conv1d(Cin, Cin, K, groups=Cin, dilation=d):
    #   y[c, i] = sum_k w[c, k] * x[c, i + k*d - pad]   (zero outside [0, L))
    # roll(x, -s) supplies x[i + s] (mod L); wrap-around contributions are killed
    # by the boundary mask already folded into taps_ref[k] at fold_params time.
    accs = [None] * nb
    for k in range(K):
        s = k * dilation - pad
        tap = taps_ref[k].astype(jnp.float32)               # (Cin, L), mask-folded
        shift = (-s) % L
        for b in range(nb):
            xr = pltpu.roll(xs[b], shift=shift, axis=1) if shift != 0 else xs[b]
            contrib = tap * xr
            accs[b] = contrib if accs[b] is None else accs[b] + contrib
    # Lane-concat per-batch results -> wide MXU RHS (Cin, Nb*L); every source
    # tile lands at a 128-aligned lane offset (no relayout).
    z = accs[0] if nb == 1 else jnp.concatenate(accs, axis=1)

    vecs = vec_ref[...].astype(jnp.float32)                  # (Cmid, 4) packed vectors
    b1 = vecs[:, 0:1]                                        # (Cmid, 1)
    b2 = vecs[:cout, 1:2]                                    # (Cout, 1)
    bn2_s = vecs[:cout, 2:3]
    bn2_t = vecs[:cout, 3:4]

    # Pointwise Conv1d(Cin, 4*Cout, 1): (Cmid, Cin) @ (Cin, Nb*L).
    y = jnp.dot(w1_ref[...].astype(jnp.float32), z,
                preferred_element_type=jnp.float32) + b1
    y = _selu(y)
    # BatchNorm1d(Cmid) (eval) and the k=1 depthwise scale/bias are folded into w2/b2.

    # Pointwise Conv1d(4*Cout, Cout, 1): (Cout, Cmid) @ (Cmid, Nb*L).
    y = jnp.dot(w2_ref[...].astype(jnp.float32), y,
                preferred_element_type=jnp.float32) + b2
    y = _selu(y)
    y = y * bn2_s + bn2_t                                    # BatchNorm1d(Cout), eval mode

    # Residual concat along channels, assembled once and written as ONE store.
    outs = []
    for b in range(nb):
        yb = y[:, b * L:(b + 1) * L]                         # 128-aligned lane slice
        outs.append(jnp.concatenate([yb, xs[b]], axis=0))    # (Cout+Cin, L)
    out_ref[...] = jnp.stack(outs, axis=0).astype(out_ref.dtype)


def _pick_batch_block(N, max_nb=8):
    """Largest divisor of N (capped) that still leaves >=2 grid steps when possible."""
    divisors = [d for d in range(1, min(N, max_nb) + 1) if N % d == 0]
    multi_step = [d for d in divisors if N // d >= 2]
    return max(multi_step) if multi_step else max(divisors)


def dcu2_forward(x_ncl, kparams, *, dilation=1, batch_block=None):
    """x_ncl: (N, Cin, L) float32, native PyTorch NCL layout."""
    N, Cin, L = x_ncl.shape
    K = kparams["taps"].shape[0]
    Cmid = kparams["w1"].shape[0]
    Cout = kparams["w2"].shape[0]
    assert kparams["taps"].shape == (K, Cin, L), "taps must be folded for this L"

    Nb = batch_block if batch_block is not None else _pick_batch_block(N)
    assert N % Nb == 0

    kernel = functools.partial(dcu2_kernel, K=K, dilation=dilation, cout=Cout)

    flops = N * L * (2 * K * Cin + 2 * Cmid * Cin + 2 * Cout * Cmid
                     + 8 * (Cmid + Cout))
    bytes_accessed = 4 * (x_ncl.size + N * (Cout + Cin) * L
                          + kparams["taps"].size + kparams["w1"].size
                          + kparams["w2"].size + kparams["vecs"].size)

    return pl.pallas_call(
        kernel,
        out_shape=jax.ShapeDtypeStruct((N, Cout + Cin, L), x_ncl.dtype),
        grid=(N // Nb,),
        in_specs=[
            pl.BlockSpec((Nb, Cin, L), lambda n: (n, 0, 0)),   # x, Nb batches / step
            pl.BlockSpec((K, Cin, L), lambda n: (0, 0, 0)),    # mask-folded dw taps (resident)
            pl.BlockSpec((Cmid, Cin), lambda n: (0, 0)),       # pointwise-1 weight (resident)
            pl.BlockSpec((Cout, Cmid), lambda n: (0, 0)),      # folded pointwise-2 weight
            pl.BlockSpec((Cmid, 4), lambda n: (0, 0)),         # packed per-channel vectors
        ],
        out_specs=pl.BlockSpec((Nb, Cout + Cin, L), lambda n: (n, 0, 0)),
        compiler_params=pltpu.CompilerParams(
            dimension_semantics=("parallel",),
            vmem_limit_bytes=32 * 1024 * 1024),
        cost_estimate=pl.CostEstimate(flops=flops,
                                      transcendentals=N * L * (Cmid + Cout),
                                      bytes_accessed=bytes_accessed),
    )(x_ncl, kparams["taps"], kparams["w1"], kparams["w2"], kparams["vecs"])


def init_raw_params(key, in_channels, out_channels, K=25):
    """Raw parameters mirroring the PyTorch module (BN at default running stats)."""
    cmid = out_channels * 4
    ks = jax.random.split(key, 10)
    return dict(
        dw1_w=0.1 * jax.random.normal(ks[0], (in_channels, 1, K), jnp.float32),
        dw1_b=0.1 * jax.random.normal(ks[1], (in_channels,), jnp.float32),
        pw1_w=0.1 * jax.random.normal(ks[2], (cmid, in_channels, 1), jnp.float32),
        pw1_b=0.1 * jax.random.normal(ks[3], (cmid,), jnp.float32),
        bn1_g=1.0 + 0.1 * jax.random.normal(ks[4], (cmid,), jnp.float32),
        bn1_b=0.1 * jax.random.normal(ks[5], (cmid,), jnp.float32),
        bn1_m=jnp.zeros((cmid,), jnp.float32),
        bn1_v=jnp.ones((cmid,), jnp.float32),
        dw2_w=0.1 * jax.random.normal(ks[6], (cmid, 1, 1), jnp.float32),
        dw2_b=0.1 * jax.random.normal(ks[7], (cmid,), jnp.float32),
        pw2_w=0.1 * jax.random.normal(ks[8], (out_channels, cmid, 1), jnp.float32),
        pw2_b=0.1 * jax.random.normal(ks[9], (out_channels,), jnp.float32),
        bn2_g=jnp.ones((out_channels,), jnp.float32),
        bn2_b=jnp.zeros((out_channels,), jnp.float32),
        bn2_m=jnp.zeros((out_channels,), jnp.float32),
        bn2_v=jnp.ones((out_channels,), jnp.float32),
        eps=1e-5,
    )


def fold_params(raw, L, *, dilation=1):
    """Fold dw1 bias into b1, (eval) BN1 + k=1 depthwise into w2/b2, and pre-build
    the lane-broadcast, boundary-masked depthwise taps for sequence length L."""
    eps = raw["eps"]
    K = raw["dw1_w"].shape[2]
    pad = (K - 1) // 2 * dilation

    W1 = raw["pw1_w"][:, :, 0]                             # (Cmid, Cin)
    b1 = W1 @ raw["dw1_b"] + raw["pw1_b"]                  # (Cmid,)

    s1 = raw["bn1_g"] / jnp.sqrt(raw["bn1_v"] + eps)
    t1 = raw["bn1_b"] - raw["bn1_m"] * s1
    a = s1 * raw["dw2_w"][:, 0, 0]                         # per-Cmid scale after SELU1
    c = t1 * raw["dw2_w"][:, 0, 0] + raw["dw2_b"]          # per-Cmid shift after SELU1

    W2 = raw["pw2_w"][:, :, 0]                             # (Cout, Cmid)
    W2f = W2 * a[None, :]
    b2 = W2 @ c + raw["pw2_b"]                             # (Cout,)

    s2 = raw["bn2_g"] / jnp.sqrt(raw["bn2_v"] + eps)
    t2 = raw["bn2_b"] - raw["bn2_m"] * s2

    cmid, cout = W1.shape[0], W2.shape[0]
    padv = lambda v: jnp.pad(v, (0, cmid - cout))
    vecs = jnp.stack([b1, padv(b2), padv(s2), padv(t2)], axis=1)   # (Cmid, 4)

    # Depthwise taps pre-broadcast over lanes with the zero-padding boundary mask
    # folded in:  taps[k, c, l] = w[c, k] * [0 <= l + k*dilation - pad < L]
    dw = raw["dw1_w"][:, 0, :]                             # (Cin, K)
    pos = jnp.arange(L)
    shifts = jnp.arange(K) * dilation - pad                # (K,)
    valid = ((pos[None, :] + shifts[:, None]) >= 0) & \
            ((pos[None, :] + shifts[:, None]) < L)         # (K, L)
    taps = dw.T[:, :, None] * valid[:, None, :].astype(jnp.float32)  # (K, Cin, L)

    return dict(taps=taps, w1=W1, w2=W2f, vecs=vecs)


def dcu2_reference(x, raw, *, dilation=1):
    """Pure-JAX reference following the unfolded PyTorch pipeline (eval-mode BN)."""
    N, Cin, L = x.shape
    K = raw["dw1_w"].shape[2]
    eps = raw["eps"]
    pad = (K - 1) // 2 * dilation
    xp = jnp.pad(x, ((0, 0), (0, 0), (pad, pad)))
    z = jnp.zeros((N, Cin, L), jnp.float32)
    for k in range(K):
        off = k * dilation
        z = z + raw["dw1_w"][:, 0, k][None, :, None] * xp[:, :, off:off + L]
    z = z + raw["dw1_b"][None, :, None]
    y = jnp.einsum("mc,ncl->nml", raw["pw1_w"][:, :, 0], z) + raw["pw1_b"][None, :, None]
    y = _selu(y)
    s1 = raw["bn1_g"] / jnp.sqrt(raw["bn1_v"] + eps)
    t1 = raw["bn1_b"] - raw["bn1_m"] * s1
    y = y * s1[None, :, None] + t1[None, :, None]
    y = y * raw["dw2_w"][:, 0, 0][None, :, None] + raw["dw2_b"][None, :, None]
    y = jnp.einsum("om,nml->nol", raw["pw2_w"][:, :, 0], y) + raw["pw2_b"][None, :, None]
    y = _selu(y)
    s2 = raw["bn2_g"] / jnp.sqrt(raw["bn2_v"] + eps)
    t2 = raw["bn2_b"] - raw["bn2_m"] * s2
    y = y * s2[None, :, None] + t2[None, :, None]
    return jnp.concatenate([y, x], axis=1)


if __name__ == "__main__":
    key = jax.random.PRNGKey(0)
    k_x, k_p = jax.random.split(key)

    N, Cin, Cout, L = 4, 4, 4, 128
    x = jax.random.normal(k_x, (N, Cin, L), jnp.float32)   # NCL like PyTorch
    raw = init_raw_params(k_p, Cin, Cout)
    kparams = fold_params(raw, L, dilation=1)

    y = dcu2_forward(x, kparams, dilation=1)
    y = jax.block_until_ready(y)

    assert y.shape == (N, Cout + Cin, L), y.shape
    assert bool(jnp.all(jnp.isfinite(y)))

    y_ref = dcu2_reference(x, raw, dilation=1)
    assert jnp.allclose(y, y_ref, atol=1e-4, rtol=1e-4), float(jnp.max(jnp.abs(y - y_ref)))

    print("KERNEL_OK")
</pallas_src>

<mosaic_0001>
module attributes {stable_mosaic.version = 11 : i64} {
  func.func @dcu2_kernel(%arg0: i32, %arg1: memref<2x4x128xf32, #tpu.memory_space<vmem>>, %arg2: memref<25x4x128xf32, #tpu.memory_space<vmem>>, %arg3: memref<16x4xf32, #tpu.memory_space<vmem>>, %arg4: memref<4x16xf32, #tpu.memory_space<vmem>>, %arg5: memref<16x4xf32, #tpu.memory_space<vmem>>, %arg6: memref<2x8x128xf32, #tpu.memory_space<vmem>>) attributes {dimension_semantics = [#tpu.dimension_semantics<parallel>], iteration_bounds = array<i64: 2>, scalar_prefetch = 0 : i64, scratch_operands = 0 : i64, tpu.core_type = #tpu.core_type<tc>, window_params = [{transform_indices = @transform_0, window_bounds = array<i64: 2, 4, 128>}, {pipeline_mode = #tpu.pipeline_mode<synchronous>, transform_indices = @transform_1, window_bounds = array<i64: 25, 4, 128>}, {pipeline_mode = #tpu.pipeline_mode<synchronous>, transform_indices = @transform_2, window_bounds = array<i64: 16, 4>}, {pipeline_mode = #tpu.pipeline_mode<synchronous>, transform_indices = @transform_3, window_bounds = array<i64: 4, 16>}, {pipeline_mode = #tpu.pipeline_mode<synchronous>, transform_indices = @transform_4, window_bounds = array<i64: 16, 4>}, {transform_indices = @transform_5, window_bounds = array<i64: 2, 8, 128>}]} {
    %c0 = arith.constant 0 : index
    %c0_0 = arith.constant 0 : index
    %c0_1 = arith.constant 0 : index
    %0 = vector.load %arg1[%c0, %c0_0, %c0_1] : memref<2x4x128xf32, #tpu.memory_space<vmem>>, vector<2x4x128xf32>
    %1 = vector.extract_strided_slice %0 {offsets = [0, 0, 0], sizes = [1, 4, 128], strides = [1, 1, 1]} : vector<2x4x128xf32> to vector<1x4x128xf32>
    %2 = vector.shape_cast %1 : vector<1x4x128xf32> to vector<4x128xf32>
    %3 = vector.extract_strided_slice %0 {offsets = [1, 0, 0], sizes = [1, 4, 128], strides = [1, 1, 1]} : vector<2x4x128xf32> to vector<1x4x128xf32>
    %4 = vector.shape_cast %3 : vector<1x4x128xf32> to vector<4x128xf32>
    %c0_2 = arith.constant 0 : index
    %c0_3 = arith.constant 0 : index
    %c0_4 = arith.constant 0 : index
    %5 = vector.load %arg2[%c0_2, %c0_3, %c0_4] : memref<25x4x128xf32, #tpu.memory_space<vmem>>, vector<1x4x128xf32>
    %6 = vector.shape_cast %5 : vector<1x4x128xf32> to vector<4x128xf32>
    %c12_i32 = arith.constant 12 : i32
    %7 = tpu.dynamic_rotate %2 by %c12_i32 dim 1 : vector<4x128xf32>, i32 -> vector<4x128xf32>
    %8 = arith.mulf %6, %7 : vector<4x128xf32>
    %c12_i32_5 = arith.constant 12 : i32
    %9 = tpu.dynamic_rotate %4 by %c12_i32_5 dim 1 : vector<4x128xf32>, i32 -> vector<4x128xf32>
    %10 = arith.mulf %6, %9 : vector<4x128xf32>
    %c1 = arith.constant 1 : index
    %c0_6 = arith.constant 0 : index
    %c0_7 = arith.constant 0 : index
    %11 = vector.load %arg2[%c1, %c0_6, %c0_7] : memref<25x4x128xf32, #tpu.memory_space<vmem>>, vector<1x4x128xf32>
    %12 = vector.shape_cast %11 : vector<1x4x128xf32> to vector<4x128xf32>
    %c11_i32 = arith.constant 11 : i32
    %13 = tpu.dynamic_rotate %2 by %c11_i32 dim 1 : vector<4x128xf32>, i32 -> vector<4x128xf32>
    %14 = arith.mulf %12, %13 : vector<4x128xf32>
    %15 = arith.addf %8, %14 : vector<4x128xf32>
    %c11_i32_8 = arith.constant 11 : i32
    %16 = tpu.dynamic_rotate %4 by %c11_i32_8 dim 1 : vector<4x128xf32>, i32 -> vector<4x128xf32>
    %17 = arith.mulf %12, %16 : vector<4x128xf32>
    %18 = arith.addf %10, %17 : vector<4x128xf32>
    %c2 = arith.constant 2 : index
    %c0_9 = arith.constant 0 : index
    %c0_10 = arith.constant 0 : index
    %19 = vector.load %arg2[%c2, %c0_9, %c0_10] : memref<25x4x128xf32, #tpu.memory_space<vmem>>, vector<1x4x128xf32>
    %20 = vector.shape_cast %19 : vector<1x4x128xf32> to vector<4x128xf32>
    %c10_i32 = arith.constant 10 : i32
    %21 = tpu.dynamic_rotate %2 by %c10_i32 dim 1 : vector<4x128xf32>, i32 -> vector<4x128xf32>
    %22 = arith.mulf %20, %21 : vector<4x128xf32>
    %23 = arith.addf %15, %22 : vector<4x128xf32>
    %c10_i32_11 = arith.constant 10 : i32
    %24 = tpu.dynamic_rotate %4 by %c10_i32_11 dim 1 : vector<4x128xf32>, i32 -> vector<4x128xf32>
    %25 = arith.mulf %20, %24 : vector<4x128xf32>
    %26 = arith.addf %18, %25 : vector<4x128xf32>
    %c3 = arith.constant 3 : index
    %c0_12 = arith.constant 0 : index
    %c0_13 = arith.constant 0 : index
    %27 = vector.load %arg2[%c3, %c0_12, %c0_13] : memref<25x4x128xf32, #tpu.memory_space<vmem>>, vector<1x4x128xf32>
    %28 = vector.shape_cast %27 : vector<1x4x128xf32> to vector<4x128xf32>
    %c9_i32 = arith.constant 9 : i32
    %29 = tpu.dynamic_rotate %2 by %c9_i32 dim 1 : vector<4x128xf32>, i32 -> vector<4x128xf32>
    %30 = arith.mulf %28, %29 : vector<4x128xf32>
    %31 = arith.addf %23, %30 : vector<4x128xf32>
    %c9_i32_14 = arith.constant 9 : i32
    %32 = tpu.dynamic_rotate %4 by %c9_i32_14 dim 1 : vector<4x128xf32>, i32 -> vector<4x128xf32>
    %33 = arith.mulf %28, %32 : vector<4x128xf32>
    %34 = arith.addf %26, %33 : vector<4x128xf32>
    %c4 = arith.constant 4 : index
    %c0_15 = arith.constant 0 : index
    %c0_16 = arith.constant 0 : index
    %35 = vector.load %arg2[%c4, %c0_15, %c0_16] : memref<25x4x128xf32, #tpu.memory_space<vmem>>, vector<1x4x128xf32>
    %36 = vector.shape_cast %35 : vector<1x4x128xf32> to vector<4x128xf32>
    %c8_i32 = arith.constant 8 : i32
    %37 = tpu.dynamic_rotate %2 by %c8_i32 dim 1 : vector<4x128xf32>, i32 -> vector<4x128xf32>
    %38 = arith.mulf %36, %37 : vector<4x128xf32>
    %39 = arith.addf %31, %38 : vector<4x128xf32>
    %c8_i32_17 = arith.constant 8 : i32
    %40 = tpu.dynamic_rotate %4 by %c8_i32_17 dim 1 : vector<4x128xf32>, i32 -> vector<4x128xf32>
    %41 = arith.mulf %36, %40 : vector<4x128xf32>
    %42 = arith.addf %34, %41 : vector<4x128xf32>
    %c5 = arith.constant 5 : index
    %c0_18 = arith.constant 0 : index
    %c0_19 = arith.constant 0 : index
    %43 = vector.load %arg2[%c5, %c0_18, %c0_19] : memref<25x4x128xf32, #tpu.memory_space<vmem>>, vector<1x4x128xf32>
    %44 = vector.shape_cast %43 : vector<1x4x128xf32> to vector<4x128xf32>
    %c7_i32 = arith.constant 7 : i32
    %45 = tpu.dynamic_rotate %2 by %c7_i32 dim 1 : vector<4x128xf32>, i32 -> vector<4x128xf32>
    %46 = arith.mulf %44, %45 : vector<4x128xf32>
    %47 = arith.addf %39, %46 : vector<4x128xf32>
    %c7_i32_20 = arith.constant 7 : i32
    %48 = tpu.dynamic_rotate %4 by %c7_i32_20 dim 1 : vector<4x128xf32>, i32 -> vector<4x128xf32>
    %49 = arith.mulf %44, %48 : vector<4x128xf32>
    %50 = arith.addf %42, %49 : vector<4x128xf32>
    %c6 = arith.constant 6 : index
    %c0_21 = arith.constant 0 : index
    %c0_22 = arith.constant 0 : index
    %51 = vector.load %arg2[%c6, %c0_21, %c0_22] : memref<25x4x128xf32, #tpu.memory_space<vmem>>, vector<1x4x128xf32>
    %52 = vector.shape_cast %51 : vector<1x4x128xf32> to vector<4x128xf32>
    %c6_i32 = arith.constant 6 : i32
    %53 = tpu.dynamic_rotate %2 by %c6_i32 dim 1 : vector<4x128xf32>, i32 -> vector<4x128xf32>
    %54 = arith.mulf %52, %53 : vector<4x128xf32>
    %55 = arith.addf %47, %54 : vector<4x128xf32>
    %c6_i32_23 = arith.constant 6 : i32
    %56 = tpu.dynamic_rotate %4 by %c6_i32_23 dim 1 : vector<4x128xf32>, i32 -> vector<4x128xf32>
    %57 = arith.mulf %52, %56 : vector<4x128xf32>
    %58 = arith.addf %50, %57 : vector<4x128xf32>
    %c7 = arith.constant 7 : index
    %c0_24 = arith.constant 0 : index
    %c0_25 = arith.constant 0 : index
    %59 = vector.load %arg2[%c7, %c0_24, %c0_25] : memref<25x4x128xf32, #tpu.memory_space<vmem>>, vector<1x4x128xf32>
    %60 = vector.shape_cast %59 : vector<1x4x128xf32> to vector<4x128xf32>
    %c5_i32 = arith.constant 5 : i32
    %61 = tpu.dynamic_rotate %2 by %c5_i32 dim 1 : vector<4x128xf32>, i32 -> vector<4x128xf32>
    %62 = arith.mulf %60, %61 : vector<4x128xf32>
    %63 = arith.addf %55, %62 : vector<4x128xf32>
    %c5_i32_26 = arith.constant 5 : i32
    %64 = tpu.dynamic_rotate %4 by %c5_i32_26 dim 1 : vector<4x128xf32>, i32 -> vector<4x128xf32>
    %65 = arith.mulf %60, %64 : vector<4x128xf32>
    %66 = arith.addf %58, %65 : vector<4x128xf32>
    %c8 = arith.constant 8 : index
    %c0_27 = arith.constant 0 : index
    %c0_28 = arith.constant 0 : index
    %67 = vector.load %arg2[%c8, %c0_27, %c0_28] : memref<25x4x128xf32, #tpu.memory_space<vmem>>, vector<1x4x128xf32>
    %68 = vector.shape_cast %67 : vector<1x4x128xf32> to vector<4x128xf32>
    %c4_i32 = arith.constant 4 : i32
    %69 = tpu.dynamic_rotate %2 by %c4_i32 dim 1 : vector<4x128xf32>, i32 -> vector<4x128xf32>
    %70 = arith.mulf %68, %69 : vector<4x128xf32>
    %71 = arith.addf %63, %70 : vector<4x128xf32>
    %c4_i32_29 = arith.constant 4 : i32
    %72 = tpu.dynamic_rotate %4 by %c4_i32_29 dim 1 : vector<4x128xf32>, i32 -> vector<4x128xf32>
    %73 = arith.mulf %68, %72 : vector<4x128xf32>
    %74 = arith.addf %66, %73 : vector<4x128xf32>
    %c9 = arith.constant 9 : index
    %c0_30 = arith.constant 0 : index
    %c0_31 = arith.constant 0 : index
    %75 = vector.load %arg2[%c9, %c0_30, %c0_31] : memref<25x4x128xf32, #tpu.memory_space<vmem>>, vector<1x4x128xf32>
    %76 = vector.shape_cast %75 : vector<1x4x128xf32> to vector<4x128xf32>
    %c3_i32 = arith.constant 3 : i32
    %77 = tpu.dynamic_rotate %2 by %c3_i32 dim 1 : vector<4x128xf32>, i32 -> vector<4x128xf32>
    %78 = arith.mulf %76, %77 : vector<4x128xf32>
    %79 = arith.addf %71, %78 : vector<4x128xf32>
    %c3_i32_32 = arith.constant 3 : i32
    %80 = tpu.dynamic_rotate %4 by %c3_i32_32 dim 1 : vector<4x128xf32>, i32 -> vector<4x128xf32>
    %81 = arith.mulf %76, %80 : vector<4x128xf32>
    %82 = arith.addf %74, %81 : vector<4x128xf32>
    %c10 = arith.constant 10 : index
    %c0_33 = arith.constant 0 : index
    %c0_34 = arith.constant 0 : index
    %83 = vector.load %arg2[%c10, %c0_33, %c0_34] : memref<25x4x128xf32, #tpu.memory_space<vmem>>, vector<1x4x128xf32>
    %84 = vector.shape_cast %83 : vector<1x4x128xf32> to vector<4x128xf32>
    %c2_i32 = arith.constant 2 : i32
    %85 = tpu.dynamic_rotate %2 by %c2_i32 dim 1 : vector<4x128xf32>, i32 -> vector<4x128xf32>
    %86 = arith.mulf %84, %85 : vector<4x128xf32>
    %87 = arith.addf %79, %86 : vector<4x128xf32>
    %c2_i32_35 = arith.constant 2 : i32
    %88 = tpu.dynamic_rotate %4 by %c2_i32_35 dim 1 : vector<4x128xf32>, i32 -> vector<4x128xf32>
    %89 = arith.mulf %84, %88 : vector<4x128xf32>
    %90 = arith.addf %82, %89 : vector<4x128xf32>
    %c11 = arith.constant 11 : index
    %c0_36 = arith.constant 0 : index
    %c0_37 = arith.constant 0 : index
    %91 = vector.load %arg2[%c11, %c0_36, %c0_37] : memref<25x4x128xf32, #tpu.memory_space<vmem>>, vector<1x4x128xf32>
    %92 = vector.shape_cast %91 : vector<1x4x128xf32> to vector<4x128xf32>
    %c1_i32 = arith.constant 1 : i32
    %93 = tpu.dynamic_rotate %2 by %c1_i32 dim 1 : vector<4x128xf32>, i32 -> vector<4x128xf32>
    %94 = arith.mulf %92, %93 : vector<4x128xf32>
    %95 = arith.addf %87, %94 : vector<4x128xf32>
    %c1_i32_38 = arith.constant 1 : i32
    %96 = tpu.dynamic_rotate %4 by %c1_i32_38 dim 1 : vector<4x128xf32>, i32 -> vector<4x128xf32>
    %97 = arith.mulf %92, %96 : vector<4x128xf32>
    %98 = arith.addf %90, %97 : vector<4x128xf32>
    %c12 = arith.constant 12 : index
    %c0_39 = arith.constant 0 : index
    %c0_40 = arith.constant 0 : index
    %99 = vector.load %arg2[%c12, %c0_39, %c0_40] : memref<25x4x128xf32, #tpu.memory_space<vmem>>, vector<1x4x128xf32>
    %100 = vector.shape_cast %99 : vector<1x4x128xf32> to vector<4x128xf32>
    %101 = arith.mulf %100, %2 : vector<4x128xf32>
    %102 = arith.addf %95, %101 : vector<4x128xf32>
    %103 = arith.mulf %100, %4 : vector<4x128xf32>
    %104 = arith.addf %98, %103 : vector<4x128xf32>
    %c13 = arith.constant 13 : index
    %c0_41 = arith.constant 0 : index
    %c0_42 = arith.constant 0 : index
    %105 = vector.load %arg2[%c13, %c0_41, %c0_42] : memref<25x4x128xf32, #tpu.memory_space<vmem>>, vector<1x4x128xf32>
    %106 = vector.shape_cast %105 : vector<1x4x128xf32> to vector<4x128xf32>
    %c127_i32 = arith.constant 127 : i32
    %107 = tpu.dynamic_rotate %2 by %c127_i32 dim 1 : vector<4x128xf32>, i32 -> vector<4x128xf32>
    %108 = arith.mulf %106, %107 : vector<4x128xf32>
    %109 = arith.addf %102, %108 : vector<4x128xf32>
    %c127_i32_43 = arith.constant 127 : i32
    %110 = tpu.dynamic_rotate %4 by %c127_i32_43 dim 1 : vector<4x128xf32>, i32 -> vector<4x128xf32>
    %111 = arith.mulf %106, %110 : vector<4x128xf32>
    %112 = arith.addf %104, %111 : vector<4x128xf32>
    %c14 = arith.constant 14 : index
    %c0_44 = arith.constant 0 : index
    %c0_45 = arith.constant 0 : index
    %113 = vector.load %arg2[%c14, %c0_44, %c0_45] : memref<25x4x128xf32, #tpu.memory_space<vmem>>, vector<1x4x128xf32>
    %114 = vector.shape_cast %113 : vector<1x4x128xf32> to vector<4x128xf32>
    %c126_i32 = arith.constant 126 : i32
    %115 = tpu.dynamic_rotate %2 by %c126_i32 dim 1 : vector<4x128xf32>, i32 -> vector<4x128xf32>
    %116 = arith.mulf %114, %115 : vector<4x128xf32>
    %117 = arith.addf %109, %116 : vector<4x128xf32>
    %c126_i32_46 = arith.constant 126 : i32
    %118 = tpu.dynamic_rotate %4 by %c126_i32_46 dim 1 : vector<4x128xf32>, i32 -> vector<4x128xf32>
    %119 = arith.mulf %114, %118 : vector<4x128xf32>
    %120 = arith.addf %112, %119 : vector<4x128xf32>
    %c15 = arith.constant 15 : index
    %c0_47 = arith.constant 0 : index
    %c0_48 = arith.constant 0 : index
    %121 = vector.load %arg2[%c15, %c0_47, %c0_48] : memref<25x4x128xf32, #tpu.memory_space<vmem>>, vector<1x4x128xf32>
    %122 = vector.shape_cast %121 : vector<1x4x128xf32> to vector<4x128xf32>
    %c125_i32 = arith.constant 125 : i32
    %123 = tpu.dynamic_rotate %2 by %c125_i32 dim 1 : vector<4x128xf32>, i32 -> vector<4x128xf32>
    %124 = arith.mulf %122, %123 : vector<4x128xf32>
    %125 = arith.addf %117, %124 : vector<4x128xf32>
    %c125_i32_49 = arith.constant 125 : i32
    %126 = tpu.dynamic_rotate %4 by %c125_i32_49 dim 1 : vector<4x128xf32>, i32 -> vector<4x128xf32>
    %127 = arith.mulf %122, %126 : vector<4x128xf32>
    %128 = arith.addf %120, %127 : vector<4x128xf32>
    %c16 = arith.constant 16 : index
    %c0_50 = arith.constant 0 : index
    %c0_51 = arith.constant 0 : index
    %129 = vector.load %arg2[%c16, %c0_50, %c0_51] : memref<25x4x128xf32, #tpu.memory_space<vmem>>, vector<1x4x128xf32>
    %130 = vector.shape_cast %129 : vector<1x4x128xf32> to vector<4x128xf32>
    %c124_i32 = arith.constant 124 : i32
    %131 = tpu.dynamic_rotate %2 by %c124_i32 dim 1 : vector<4x128xf32>, i32 -> vector<4x128xf32>
    %132 = arith.mulf %130, %131 : vector<4x128xf32>
    %133 = arith.addf %125, %132 : vector<4x128xf32>
    %c124_i32_52 = arith.constant 124 : i32
    %134 = tpu.dynamic_rotate %4 by %c124_i32_52 dim 1 : vector<4x128xf32>, i32 -> vector<4x128xf32>
    %135 = arith.mulf %130, %134 : vector<4x128xf32>
    %136 = arith.addf %128, %135 : vector<4x128xf32>
    %c17 = arith.constant 17 : index
    %c0_53 = arith.constant 0 : index
    %c0_54 = arith.constant 0 : index
    %137 = vector.load %arg2[%c17, %c0_53, %c0_54] : memref<25x4x128xf32, #tpu.memory_space<vmem>>, vector<1x4x128xf32>
    %138 = vector.shape_cast %137 : vector<1x4x128xf32> to vector<4x128xf32>
    %c123_i32 = arith.constant 123 : i32
    %139 = tpu.dynamic_rotate %2 by %c123_i32 dim 1 : vector<4x128xf32>, i32 -> vector<4x128xf32>
    %140 = arith.mulf %138, %139 : vector<4x128xf32>
    %141 = arith.addf %133, %140 : vector<4x128xf32>
    %c123_i32_55 = arith.constant 123 : i32
    %142 = tpu.dynamic_rotate %4 by %c123_i32_55 dim 1 : vector<4x128xf32>, i32 -> vector<4x128xf32>
    %143 = arith.mulf %138, %142 : vector<4x128xf32>
    %144 = arith.addf %136, %143 : vector<4x128xf32>
    %c18 = arith.constant 18 : index
    %c0_56 = arith.constant 0 : index
    %c0_57 = arith.constant 0 : index
    %145 = vector.load %arg2[%c18, %c0_56, %c0_57] : memref<25x4x128xf32, #tpu.memory_space<vmem>>, vector<1x4x128xf32>
    %146 = vector.shape_cast %145 : vector<1x4x128xf32> to vector<4x128xf32>
    %c122_i32 = arith.constant 122 : i32
    %147 = tpu.dynamic_rotate %2 by %c122_i32 dim 1 : vector<4x128xf32>, i32 -> vector<4x128xf32>
    %148 = arith.mulf %146, %147 : vector<4x128xf32>
    %149 = arith.addf %141, %148 : vector<4x128xf32>
    %c122_i32_58 = arith.constant 122 : i32
    %150 = tpu.dynamic_rotate %4 by %c122_i32_58 dim 1 : vector<4x128xf32>, i32 -> vector<4x128xf32>
    %151 = arith.mulf %146, %150 : vector<4x128xf32>
    %152 = arith.addf %144, %151 : vector<4x128xf32>
    %c19 = arith.constant 19 : index
    %c0_59 = arith.constant 0 : index
    %c0_60 = arith.constant 0 : index
    %153 = vector.load %arg2[%c19, %c0_59, %c0_60] : memref<25x4x128xf32, #tpu.memory_space<vmem>>, vector<1x4x128xf32>
    %154 = vector.shape_cast %153 : vector<1x4x128xf32> to vector<4x128xf32>
    %c121_i32 = arith.constant 121 : i32
    %155 = tpu.dynamic_rotate %2 by %c121_i32 dim 1 : vector<4x128xf32>, i32 -> vector<4x128xf32>
    %156 = arith.mulf %154, %155 : vector<4x128xf32>
    %157 = arith.addf %149, %156 : vector<4x128xf32>
    %c121_i32_61 = arith.constant 121 : i32
    %158 = tpu.dynamic_rotate %4 by %c121_i32_61 dim 1 : vector<4x128xf32>, i32 -> vector<4x128xf32>
    %159 = arith.mulf %154, %158 : vector<4x128xf32>
    %160 = arith.addf %152, %159 : vector<4x128xf32>
    %c20 = arith.constant 20 : index
    %c0_62 = arith.constant 0 : index
    %c0_63 = arith.constant 0 : index
    %161 = vector.load %arg2[%c20, %c0_62, %c0_63] : memref<25x4x128xf32, #tpu.memory_space<vmem>>, vector<1x4x128xf32>
    %162 = vector.shape_cast %161 : vector<1x4x128xf32> to vector<4x128xf32>
    %c120_i32 = arith.constant 120 : i32
    %163 = tpu.dynamic_rotate %2 by %c120_i32 dim 1 : vector<4x128xf32>, i32 -> vector<4x128xf32>
    %164 = arith.mulf %162, %163 : vector<4x128xf32>
    %165 = arith.addf %157, %164 : vector<4x128xf32>
    %c120_i32_64 = arith.constant 120 : i32
    %166 = tpu.dynamic_rotate %4 by %c120_i32_64 dim 1 : vector<4x128xf32>, i32 -> vector<4x128xf32>
    %167 = arith.mulf %162, %166 : vector<4x128xf32>
    %168 = arith.addf %160, %167 : vector<4x128xf32>
    %c21 = arith.constant 21 : index
    %c0_65 = arith.constant 0 : index
    %c0_66 = arith.constant 0 : index
    %169 = vector.load %arg2[%c21, %c0_65, %c0_66] : memref<25x4x128xf32, #tpu.memory_space<vmem>>, vector<1x4x128xf32>
    %170 = vector.shape_cast %169 : vector<1x4x128xf32> to vector<4x128xf32>
    %c119_i32 = arith.constant 119 : i32
    %171 = tpu.dynamic_rotate %2 by %c119_i32 dim 1 : vector<4x128xf32>, i32 -> vector<4x128xf32>
    %172 = arith.mulf %170, %171 : vector<4x128xf32>
    %173 = arith.addf %165, %172 : vector<4x128xf32>
    %c119_i32_67 = arith.constant 119 : i32
    %174 = tpu.dynamic_rotate %4 by %c119_i32_67 dim 1 : vector<4x128xf32>, i32 -> vector<4x128xf32>
    %175 = arith.mulf %170, %174 : vector<4x128xf32>
    %176 = arith.addf %168, %175 : vector<4x128xf32>
    %c22 = arith.constant 22 : index
    %c0_68 = arith.constant 0 : index
    %c0_69 = arith.constant 0 : index
    %177 = vector.load %arg2[%c22, %c0_68, %c0_69] : memref<25x4x128xf32, #tpu.memory_space<vmem>>, vector<1x4x128xf32>
    %178 = vector.shape_cast %177 : vector<1x4x128xf32> to vector<4x128xf32>
    %c118_i32 = arith.constant 118 : i32
    %179 = tpu.dynamic_rotate %2 by %c118_i32 dim 1 : vector<4x128xf32>, i32 -> vector<4x128xf32>
    %180 = arith.mulf %178, %179 : vector<4x128xf32>
    %181 = arith.addf %173, %180 : vector<4x128xf32>
    %c118_i32_70 = arith.constant 118 : i32
    %182 = tpu.dynamic_rotate %4 by %c118_i32_70 dim 1 : vector<4x128xf32>, i32 -> vector<4x128xf32>
    %183 = arith.mulf %178, %182 : vector<4x128xf32>
    %184 = arith.addf %176, %183 : vector<4x128xf32>
    %c23 = arith.constant 23 : index
    %c0_71 = arith.constant 0 : index
    %c0_72 = arith.constant 0 : index
    %185 = vector.load %arg2[%c23, %c0_71, %c0_72] : memref<25x4x128xf32, #tpu.memory_space<vmem>>, vector<1x4x128xf32>
    %186 = vector.shape_cast %185 : vector<1x4x128xf32> to vector<4x128xf32>
    %c117_i32 = arith.constant 117 : i32
    %187 = tpu.dynamic_rotate %2 by %c117_i32 dim 1 : vector<4x128xf32>, i32 -> vector<4x128xf32>
    %188 = arith.mulf %186, %187 : vector<4x128xf32>
    %189 = arith.addf %181, %188 : vector<4x128xf32>
    %c117_i32_73 = arith.constant 117 : i32
    %190 = tpu.dynamic_rotate %4 by %c117_i32_73 dim 1 : vector<4x128xf32>, i32 -> vector<4x128xf32>
    %191 = arith.mulf %186, %190 : vector<4x128xf32>
    %192 = arith.addf %184, %191 : vector<4x128xf32>
    %c24 = arith.constant 24 : index
    %c0_74 = arith.constant 0 : index
    %c0_75 = arith.constant 0 : index
    %193 = vector.load %arg2[%c24, %c0_74, %c0_75] : memref<25x4x128xf32, #tpu.memory_space<vmem>>, vector<1x4x128xf32>
    %194 = vector.shape_cast %193 : vector<1x4x128xf32> to vector<4x128xf32>
    %c116_i32 = arith.constant 116 : i32
    %195 = tpu.dynamic_rotate %2 by %c116_i32 dim 1 : vector<4x128xf32>, i32 -> vector<4x128xf32>
    %196 = arith.mulf %194, %195 : vector<4x128xf32>
    %197 = arith.addf %189, %196 : vector<4x128xf32>
    %c116_i32_76 = arith.constant 116 : i32
    %198 = tpu.dynamic_rotate %4 by %c116_i32_76 dim 1 : vector<4x128xf32>, i32 -> vector<4x128xf32>
    %199 = arith.mulf %194, %198 : vector<4x128xf32>
    %200 = arith.addf %192, %199 : vector<4x128xf32>
    %201 = tpu.concatenate %197, %200 in 1 : vector<4x128xf32>, vector<4x128xf32> -> vector<4x256xf32>
    %c0_77 = arith.constant 0 : index
    %c0_78 = arith.constant 0 : index
    %202 = vector.load %arg5[%c0_77, %c0_78] : memref<16x4xf32, #tpu.memory_space<vmem>>, vector<16x4xf32>
    %203 = vector.extract_strided_slice %202 {offsets = [0, 0], sizes = [16, 1], strides = [1, 1]} : vector<16x4xf32> to vector<16x1xf32>
    %204 = vector.extract_strided_slice %202 {offsets = [0, 1], sizes = [4, 1], strides = [1, 1]} : vector<16x4xf32> to vector<4x1xf32>
    %205 = vector.extract_strided_slice %202 {offsets = [0, 2], sizes = [4, 1], strides = [1, 1]} : vector<16x4xf32> to vector<4x1xf32>
    %206 = vector.extract_strided_slice %202 {offsets = [0, 3], sizes = [4, 1], strides = [1, 1]} : vector<16x4xf32> to vector<4x1xf32>
    %c0_79 = arith.constant 0 : index
    %c0_80 = arith.constant 0 : index
    %207 = vector.load %arg3[%c0_79, %c0_80] : memref<16x4xf32, #tpu.memory_space<vmem>>, vector<16x4xf32>
    %cst = arith.constant dense<0.000000e+00> : vector<16x256xf32>
    %208 = tpu.matmul %207, %201, %cst {dimension_numbers = #tpu.dot_dimension_numbers<[1], [0], [0], [1], [0, 0, 1, 1], [], []>} : vector<16x4xf32>, vector<4x256xf32>, vector<16x256xf32> -> vector<16x256xf32>
    %209 = vector.broadcast %203 : vector<16x1xf32> to vector<16x256xf32>
    %210 = arith.addf %208, %209 : vector<16x256xf32>
    %cst_81 = arith.constant 0.000000e+00 : f32
    %211 = vector.broadcast %cst_81 : f32 to vector<16x256xf32>
    %212 = arith.cmpf ogt, %210, %211 : vector<16x256xf32>
    %cst_82 = arith.constant 0.000000e+00 : f32
    %213 = vector.broadcast %cst_82 : f32 to vector<16x256xf32>
    %214 = arith.minimumf %210, %213 : vector<16x256xf32>
    %215 = math.exp %214 : vector<16x256xf32>
    %cst_83 = arith.constant 1.000000e+00 : f32
    %216 = vector.broadcast %cst_83 : f32 to vector<16x256xf32>
    %217 = arith.subf %215, %216 : vector<16x256xf32>
    %cst_84 = arith.constant 1.67326319 : f32
    %218 = vector.broadcast %cst_84 : f32 to vector<16x256xf32>
    %219 = arith.mulf %218, %217 : vector<16x256xf32>
    %220 = arith.select %212, %210, %219 : vector<16x256xi1>, vector<16x256xf32>
    %cst_85 = arith.constant 1.05070102 : f32
    %221 = vector.broadcast %cst_85 : f32 to vector<16x256xf32>
    %222 = arith.mulf %221, %220 : vector<16x256xf32>
    %c0_86 = arith.constant 0 : index
    %c0_87 = arith.constant 0 : index
    %223 = vector.load %arg4[%c0_86, %c0_87] : memref<4x16xf32, #tpu.memory_space<vmem>>, vector<4x16xf32>
    %cst_88 = arith.constant dense<0.000000e+00> : vector<4x256xf32>
    %224 = tpu.matmul %223, %222, %cst_88 {dimension_numbers = #tpu.dot_dimension_numbers<[1], [0], [0], [1], [0, 0, 1, 1], [], []>} : vector<4x16xf32>, vector<16x256xf32>, vector<4x256xf32> -> vector<4x256xf32>
    %225 = vector.broadcast %204 : vector<4x1xf32> to vector<4x256xf32>
    %226 = arith.addf %224, %225 : vector<4x256xf32>
    %cst_89 = arith.constant 0.000000e+00 : f32
    %227 = vector.broadcast %cst_89 : f32 to vector<4x256xf32>
    %228 = arith.cmpf ogt, %226, %227 : vector<4x256xf32>
    %cst_90 = arith.constant 0.000000e+00 : f32
    %229 = vector.broadcast %cst_90 : f32 to vector<4x256xf32>
    %230 = arith.minimumf %226, %229 : vector<4x256xf32>
    %231 = math.exp %230 : vector<4x256xf32>
    %cst_91 = arith.constant 1.000000e+00 : f32
    %232 = vector.broadcast %cst_91 : f32 to vector<4x256xf32>
    %233 = arith.subf %231, %232 : vector<4x256xf32>
    %cst_92 = arith.constant 1.67326319 : f32
    %234 = vector.broadcast %cst_92 : f32 to vector<4x256xf32>
    %235 = arith.mulf %234, %233 : vector<4x256xf32>
    %236 = arith.select %228, %226, %235 : vector<4x256xi1>, vector<4x256xf32>
    %cst_93 = arith.constant 1.05070102 : f32
    %237 = vector.broadcast %cst_93 : f32 to vector<4x256xf32>
    %238 = arith.mulf %237, %236 : vector<4x256xf32>
    %239 = vector.broadcast %205 : vector<4x1xf32> to vector<4x256xf32>
    %240 = arith.mulf %238, %239 : vector<4x256xf32>
    %241 = vector.broadcast %206 : vector<4x1xf32> to vector<4x256xf32>
    %242 = arith.addf %240, %241 : vector<4x256xf32>
    %243 = vector.extract_strided_slice %242 {offsets = [0, 0], sizes = [4, 128], strides = [1, 1]} : vector<4x256xf32> to vector<4x128xf32>
    %244 = tpu.concatenate %243, %2 in 0 : vector<4x128xf32>, vector<4x128xf32> -> vector<8x128xf32>
    %245 = vector.extract_strided_slice %242 {offsets = [0, 128], sizes = [4, 128], strides = [1, 1]} : vector<4x256xf32> to vector<4x128xf32>
    %246 = tpu.concatenate %245, %4 in 0 : vector<4x128xf32>, vector<4x128xf32> -> vector<8x128xf32>
    %247 = vector.shape_cast %244 : vector<8x128xf32> to vector<1x8x128xf32>
    %248 = vector.shape_cast %246 : vector<8x128xf32> to vector<1x8x128xf32>
    %249 = tpu.concatenate %247, %248 in 0 : vector<1x8x128xf32>, vector<1x8x128xf32> -> vector<2x8x128xf32>
    %c0_94 = arith.constant 0 : index
    %c0_95 = arith.constant 0 : index
    %c0_96 = arith.constant 0 : index
    %250 = vector.load %arg6[%c0_94, %c0_95, %c0_96] : memref<2x8x128xf32, #tpu.memory_space<vmem>>, vector<2x8x128xf32>
    tpu.vector_store %arg6[%c0_94, %c0_95, %c0_96], %249 {strides = array<i32>} : memref<2x8x128xf32, #tpu.memory_space<vmem>>, vector<2x8x128xf32>,
    return
  }
  func.func @transform_0(%arg0: i32) -> (i32, i32, i32) {
    %c0_i32 = arith.constant 0 : i32
    %c0_i32_0 = arith.constant 0 : i32
    %c0_i32_1 = arith.constant 0 : i32
    return %arg0, %c0_i32, %c0_i32_0 : i32, i32, i32
  }
  func.func @transform_1(%arg0: i32) -> (i32, i32, i32) {
    %c0_i32 = arith.constant 0 : i32
    %c0_i32_0 = arith.constant 0 : i32
    %c0_i32_1 = arith.constant 0 : i32
    %c0_i32_2 = arith.constant 0 : i32
    return %c0_i32, %c0_i32_0, %c0_i32_1 : i32, i32, i32
  }
  func.func @transform_2(%arg0: i32) -> (i32, i32) {
    %c0_i32 = arith.constant 0 : i32
    %c0_i32_0 = arith.constant 0 : i32
    %c0_i32_1 = arith.constant 0 : i32
    return %c0_i32, %c0_i32_0 : i32, i32
  }
  func.func @transform_3(%arg0: i32) -> (i32, i32) {
    %c0_i32 = arith.constant 0 : i32
    %c0_i32_0 = arith.constant 0 : i32
    %c0_i32_1 = arith.constant 0 : i32
    return %c0_i32, %c0_i32_0 : i32, i32
  }
  func.func @transform_4(%arg0: i32) -> (i32, i32) {
    %c0_i32 = arith.constant 0 : i32
    %c0_i32_0 = arith.constant 0 : i32
    %c0_i32_1 = arith.constant 0 : i32
    return %c0_i32, %c0_i32_0 : i32, i32
  }
  func.func @transform_5(%arg0: i32) -> (i32, i32, i32) {
    %c0_i32 = arith.constant 0 : i32
    %c0_i32_0 = arith.constant 0 : i32
    %c0_i32_1 = arith.constant 0 : i32
    return %arg0, %c0_i32, %c0_i32_0 : i32, i32, i32
  }
}

</mosaic_0001>

<bundles_post_ra>
// kernel: tpu_custom_call.1
= control target key start
LH: loop header
LB: loop body
LE: loop exit
PB: predicated region body
PF: predicated region fallthrough
CT: control target
= control target key end

     0   :  { %10 = vsyncpa [#allocation3], 0  ;;  %s1253_s0 = inlined_call_operand.vmem [shape: f32[4,4,128], index: 0, kind: input, shape index: {}]   ;;  %s1254_s1 = inlined_call_operand.hbm [shape: f32[25,4,128], index: 1, kind: input, shape index: {}]   ;;  %s1255_s2 = inlined_call_operand.vmem [shape: f32[16,4], index: 2, kind: input, shape index: {}]   ;;  %s1256_s3 = inlined_call_operand.vmem [shape: f32[4,16], index: 3, kind: input, shape index: {}]   ;;  %s1257_s4 = inlined_call_operand.vmem [shape: f32[16,4], index: 4, kind: input, shape index: {}]   ;;  %s1258_s5 = inlined_call_operand.hbm [shape: f32[4,8,128], index: 5, kind: output, shape index: {}]  }
   0x1   :  { %11 = vsyncpa [#allocation4], 0 }
   0x2   :  { %13 = vsyncpa [#allocation4 + $0x1], 0  ;;  %s1059_s18 = smov 0   ;;  %s1061_s19 = smov 0  }
   0x3   :  { %s1063_s20 = smov 0   ;;  %s1065_s21 = smov 0  }
   0x4 LB: > { %s1080_s22 = sadd.s32 4294967295, %s995_s21   ;;  %s771_s23 = sadd.s32 4294967294, %s995_s21   ;;  %s995_s21 = sphi %s1065_s21, %s1264_s21   ;;  %s991_s20 = sphi %s1063_s20, %s1263_s20   ;;  %s987_s19 = sphi %s1061_s19, %s1262_s19   ;;  %s983_s18 = sphi %s1059_s18, %s1261_s18  }
   0x5   : > { %s1084_s24 = sadd.s32 1, %s995_s21   ;;  %s136_s25 = sadd.s32 1, %s991_s20 }
   0x6   : > { %s133_s26 = ssub.s32 %s995_s21, %s1084_s24  ;;  %p146_p0 = scmp.ne.s32.totalorder %s991_s20, %s987_s19 }
   0x7   : > { %p134_p1 = scmp.eq.s32.totalorder %s133_s26, 0  ;;  %p147_p2 = scmp.eq.s32.totalorder %s1080_s22, 1 }
   0x8   : > { %p152_p3 = scmp.ne.s32.totalorder %s987_s19, %s983_s18  ;;  %p153_p4 = scmp.eq.s32.totalorder %s771_s23, 1 }
   0x9   : > { %s1095_s27 = scalar_select %p134_p1, %s991_s20, %s136_s25  }
   0xa   : > { %p1097_p5 = por %p147_p2, %p146_p0  ;;  %p1101_p6 = por %p153_p4, %p152_p3 }
   0xb   : > { %p772_p7 = scmp.ge.s32.totalorder %s995_s21, 1  ;;  %p160_p8 = scmp.lt.s32.totalorder %s995_s21, 3 }
   0xc   : > { %p814_p9 = scmp.eq.s32.totalorder %s1080_s22, 0  ;;  %s171_s7 = sshll.u32 %s1254_s1, 4  ;;  %s172_s7 = int_to_ptr.hbm [resolvable:$true] %s171_s7 }
   0xd   : > { %p161_p10 = pnand %p772_p7, %p160_p8  ;;  %s997_s8 = smov [#allocation2]  }
   0xe   : > { %s173_s9 = sshll.u32 %s997_s8, 4  ;;  %s998_s10 = smov 64   ;;  %s174_s9 = int_to_ptr.vmem [resolvable:$true] %s173_s9 }
   0xf   : > { %p806_p11 = pneg %p161_p10  ;;  %s999_s11 = smov 4  }
  0x10   : > { %207 = sbr.rel (%p161_p10) target bundleno = 589 (0x24d), region = 40 }
  0x11   : > { %p807_p12 = pnand %p814_p9, %p806_p11 }
  0x13   : > { %809 = dma.hbm_to_vmem [thread:$0]  (!%p807_p12), %s172_s7, 1600, %s174_s9, [#allocation3], %s998_s10, %s998_s10, %s999_s11  }
  0x15   : > { %974 = dma.done.wait (%p814_p9), [#allocation3], 1600  }
  0x16   : > { %976 = vsyncadd (%p814_p9), [#allocation3], 4294965696  ;;  %s778_s12 = sshll.u32 %s1080_s22, 1  ;;  %s1000_s17 = smov 11   ;;  %v253_v5 = vld [vmem:[#allocation2 + $0x4] sm:$0xf] }
  0x17   : > { %p237_p13 = scmp.lt.s32.totalorder %s778_s12, 3  ;;  %s1001_s23 = smov 12   ;;  %v245_v6 = vld [vmem:[#allocation2] sm:$0xf]  ;;  %v263_v7 = vld [vmem:[#allocation2 + $0x8] sm:$0xf] }
  0x18   : > { %s1002_s25 = smov 10   ;;  %s1003_s26 = smov 9   ;;  %v273_v24 = vld [vmem:[#allocation2 + $0xc] sm:$0xf]  ;;  %v283_v45 = vld [vmem:[#allocation2 + $0x10] sm:$0xf] }
  0x19   : > { %s1266_s12 = smov (!%p237_p13, %s778_s12), 3  ;;  %s1004_s30 = smov 8   ;;  %v293_v46 = vld [vmem:[#allocation2 + $0x14] sm:$0xf]  ;;  %v303_v51 = vld [vmem:[#allocation2 + $0x18] sm:$0xf] }
  0x1a   : > { %s779_s13 = sshll.u32 %s1266_s12, 2  ;;  %s1005_s6 = smov 7   ;;  %v313_v57 = vld [vmem:[#allocation2 + $0x1c] sm:$0xf]  ;;  %v323_v61 = vld [vmem:[#allocation2 + $0x20] sm:$0xf] }
  0x1b   : > { %s240_s16 = scalar_lea.vmem %s1253_s0, %s779_s13  ;;  %s1006_s7 = smov 6   ;;  %vm509_vm0 = vcmask 1043456   ;;  %vm502_vm1 = vcmask 31744   ;;  %vm599_vm6 = vcmask 130048  }
  0x1c   : > { %v1121_v0 = vld [vmem:[%s240_s16] sm:$0xf]  ;;  %v1126_v1 = vld [vmem:[%s240_s16 + $0x4] sm:$0xf]  ;;  %s1007_s8 = smov 5   ;;  %s1008_s9 = smov 4  }
  0x1d   : > { %254 = vrot.lane.b32.xlu1 %v1121_v0, %s1000_s17  ;;  %246 = vrot.lane.b32.xlu0 %v1121_v0, %s1001_s23  ;;  %s1009_s10 = smov 3   ;;  %s1010_s11 = smov 2  }
  0x1e   : > { %264 = vrot.lane.b32.xlu2 %v1121_v0, %s1002_s25  ;;  %s1011_s12 = smov 1   ;;  %s1012_s13 = smov 127  }
  0x1f   : > { %s1013_s14 = smov 126   ;;  %s1014_s15 = smov 125  }
  0x20   : > { %s1015_s16 = smov 124  }
  0x25   : > { %258 = vrot.lane.b32.xlu1 %v1126_v1, %s1000_s17  ;;  %249 = vrot.lane.b32.xlu0 %v1126_v1, %s1001_s23  ;;  %s1016_s17 = smov 123   ;;  %s1017_s23 = smov 122  }
  0x26   : > { %268 = vrot.lane.b32.xlu2 %v1126_v1, %s1002_s25  ;;  %s1018_s25 = smov 121  }
  0x2d   : > { %278 = vrot.lane.b32.xlu1 %v1126_v1, %s1003_s26  ;;  %274 = vrot.lane.b32.xlu0 %v1121_v0, %s1003_s26  ;;  %s1019_s26 = smov 120  }
  0x2e   : > { %284 = vrot.lane.b32.xlu2 %v1121_v0, %s1004_s30 }
  0x35   : > { %294 = vrot.lane.b32.xlu1 %v1121_v0, %s1005_s6  ;;  %288 = vrot.lane.b32.xlu0 %v1126_v1, %s1004_s30 }
  0x36   : > { %298 = vrot.lane.b32.xlu2 %v1126_v1, %s1005_s6  ;;  %s1020_s6 = smov 119  }
  0x3d   : > { %308 = vrot.lane.b32.xlu1 %v1126_v1, %s1006_s7  ;;  %304 = vrot.lane.b32.xlu0 %v1121_v0, %s1006_s7  ;;  %s1021_s7 = smov 118  }
  0x3e   : > { %314 = vrot.lane.b32.xlu2 %v1121_v0, %s1007_s8 }
  0x45   : > { %324 = vrot.lane.b32.xlu1 %v1121_v0, %s1008_s9  ;;  %318 = vrot.lane.b32.xlu0 %v1126_v1, %s1007_s8  ;;  %s1022_s8 = smov 117  }
  0x46   : > { %328 = vrot.lane.b32.xlu2 %v1126_v1, %s1008_s9  ;;  %s1023_s9 = smov 116  }
  0x4d   : > { %338 = vrot.lane.b32.xlu1 %v1126_v1, %s1009_s10  ;;  %334 = vrot.lane.b32.xlu0 %v1121_v0, %s1009_s10 }
  0x4e   : > { %344 = vrot.lane.b32.xlu2 %v1121_v0, %s1010_s11 }
  0x55   : > { %354 = vrot.lane.b32.xlu1 %v1121_v0, %s1011_s12  ;;  %348 = vrot.lane.b32.xlu0 %v1126_v1, %s1010_s11 }
  0x56   : > { %358 = vrot.lane.b32.xlu2 %v1126_v1, %s1011_s12 }
  0x5d   : > { %374 = vrot.lane.b32.xlu1 %v1126_v1, %s1012_s13  ;;  %370 = vrot.lane.b32.xlu0 %v1121_v0, %s1012_s13 }
  0x5e   : > { %380 = vrot.lane.b32.xlu2 %v1121_v0, %s1013_s14 }
  0x65   : > { %390 = vrot.lane.b32.xlu1 %v1121_v0, %s1014_s15  ;;  %384 = vrot.lane.b32.xlu0 %v1126_v1, %s1013_s14 }
  0x66   : > { %394 = vrot.lane.b32.xlu2 %v1126_v1, %s1014_s15 }
  0x6d   : > { %404 = vrot.lane.b32.xlu1 %v1126_v1, %s1015_s16  ;;  %400 = vrot.lane.b32.xlu0 %v1121_v0, %s1015_s16 }
  0x6e   : > { %410 = vrot.lane.b32.xlu2 %v1121_v0, %s1016_s17 }
  0x75   : > { %420 = vrot.lane.b32.xlu1 %v1121_v0, %s1017_s23  ;;  %414 = vrot.lane.b32.xlu0 %v1126_v1, %s1016_s17 }
  0x76   : > { %424 = vrot.lane.b32.xlu2 %v1126_v1, %s1017_s23  ;;  %s949_s23 = scalar_lea.hbm %s1258_s5, 32 }
  0x78   : > { %v265_v2 = vpop.permute.xlu2 %264 }
  0x79   : > { %v266_v12 = vmul.f32 %v265_v2, %v263_v7 }
  0x7d   : > { %434 = vrot.lane.b32.xlu1 %v1126_v1, %s1018_s25  ;;  %430 = vrot.lane.b32.xlu0 %v1121_v0, %s1018_s25 }
  0x7e   : > { %440 = vrot.lane.b32.xlu2 %v1121_v0, %s1019_s26 }
  0x80   : > { %v269_v3 = vpop.permute.xlu2 %268 }
  0x81   : > { %v270_v20 = vmul.f32 %v269_v3, %v263_v7 }
  0x85   : > { %450 = vrot.lane.b32.xlu1 %v1121_v0, %s1020_s6  ;;  %444 = vrot.lane.b32.xlu0 %v1126_v1, %s1019_s26  ;;  %s233_s26 = sand.u32 1, %s987_s19  }
  0x86   : > { %454 = vrot.lane.b32.xlu2 %v1126_v1, %s1020_s6  ;;  %s777_s6 = sshll.u32 %s233_s26, 4  ;;  %s682_s13 = scalar_lea.sflag [#allocation4], %s233_s26 }
  0x87   : > { %s235_s11 = scalar_lea.vmem [#allocation5], %s777_s6 }
  0x88   : > { %v285_v4 = vpop.permute.xlu2 %284  ;;  %s694_s12 = sshll.u32 %s235_s11, 4  ;;  %s695_s12 = int_to_ptr.vmem [resolvable:$true] %s694_s12 }
  0x89   : > { %v286_v50 = vmul.f32 %v285_v4, %v283_v45 }
  0x8d   : > { %464 = vrot.lane.b32.xlu1 %v1126_v1, %s1021_s7  ;;  %460 = vrot.lane.b32.xlu0 %v1121_v0, %s1021_s7  ;;  %s799_s7 = sshll.u32 %s1080_s22, 4 }
  0x8e   : > { %470 = vrot.lane.b32.xlu2 %v1121_v0, %s1022_s8  ;;  %s693_s10 = scalar_lea.hbm %s1258_s5, %s799_s7 }
  0x8f   : > { %v255_v8 = vpop.permute.xlu1 %254  ;;  %v247_v9 = vpop.permute.xlu0 %246  ;;  %s696_s22 = sshll.u32 %s693_s10, 4  ;;  %s697_s22 = int_to_ptr.hbm [resolvable:$true] %s696_s22 }
  0x90   : > { %v256_v10 = vmul.f32 %v255_v8, %v253_v5  ;;  %v248_v11 = vmul.f32 %v247_v9, %v245_v6  ;;  %v299_v13 = vpop.permute.xlu2 %298  ;;  %s943_s14 = sshra.s32 %s697_s22, 4  ;;  %s944_s14 = int_to_ptr.hbm [resolvable:$true] %s943_s14 }
  0x91   : > { %v300_v60 = vmul.f32 %v299_v13, %v293_v46  ;;  %v353_v13 = vld [vmem:[#allocation2 + $0x2c] sm:$0xf]  ;;  %s945_s15 = scalar_lea.hbm %s944_s14, 16  ;;  %p950_p3 = scmp.lt.s32.totalorder %s944_s14, %s1258_s5 }
  0x92   : > { %v257_v14 = vadd.f32 %v256_v10, %v248_v11  ;;  %p946_p0 = scmp.ne.s32.totalorder %s944_s14, %s945_s15  ;;  %p951_p4 = scmp.lt.s32.totalorder %s949_s23, %s945_s15 }
  0x94   : > { %v267_v15 = vadd.f32 %v266_v12, %v257_v14  ;;  %v343_v14 = vld [vmem:[#allocation2 + $0x28] sm:$0xf]  ;;  %p947_p1 = pnand %p946_p0, %p1097_p5  ;;  %p952_p7 = por %p951_p4, %p950_p3 }
  0x95   : > { %480 = vrot.lane.b32.xlu1 %v1121_v0, %s1023_s9  ;;  %474 = vrot.lane.b32.xlu0 %v1126_v1, %s1022_s8 }
  0x96   : > { %484 = vrot.lane.b32.xlu2 %v1126_v1, %s1023_s9  ;;  %p948_p2 = pneg %p947_p1 }
  0x97   : > { %v259_v16 = vpop.permute.xlu1 %258  ;;  %v250_v17 = vpop.permute.xlu0 %249 }
  0x98   : > { %v260_v18 = vmul.f32 %v259_v16, %v253_v5  ;;  %v251_v19 = vmul.f32 %v250_v17, %v245_v6  ;;  %v315_v21 = vpop.permute.xlu2 %314  ;;  %v333_v6 = vld [vmem:[#allocation2 + $0x24] sm:$0xf]  ;;  %p953_p8 = pnand %p952_p7, %p948_p2 }
  0x99   : > { %v316_v5 = vmul.f32 %v315_v21, %v313_v57 }
  0x9a   : > { %v261_v22 = vadd.f32 %v260_v18, %v251_v19 }
  0x9c   : > { %v271_v23 = vadd.f32 %v270_v20, %v261_v22 }
  0x9f   : > { %v279_v25 = vpop.permute.xlu1 %278  ;;  %v275_v26 = vpop.permute.xlu0 %274 }
  0xa0   : > { %v280_v27 = vmul.f32 %v279_v25, %v273_v24  ;;  %v329_v28 = vpop.permute.xlu2 %328  ;;  %v276_v44 = vmul.f32 %v275_v26, %v273_v24  ;;  %v363_v26 = vld [vmem:[#allocation2 + $0x30] sm:$0xf] }
  0xa1   : > { %v330_v17 = vmul.f32 %v329_v28, %v323_v61 }
  0xa2   : > { %v281_v29 = vadd.f32 %v280_v27, %v271_v23  ;;  %v277_v49 = vadd.f32 %v276_v44, %v267_v15 }
  0xa4   : > { %v287_v55 = vadd.f32 %v286_v50, %v277_v49 }
  0xa7   : > { %v295_v30 = vpop.permute.xlu1 %294  ;;  %v289_v31 = vpop.permute.xlu0 %288 }
  0xa8   : > { %v345_v32 = vpop.permute.xlu2 %344  ;;  %v296_v52 = vmul.f32 %v295_v30, %v293_v46  ;;  %v290_v53 = vmul.f32 %v289_v31, %v283_v45  ;;  %v369_v30 = vld [vmem:[#allocation2 + $0x34] sm:$0xf]  ;;  %v379_v45 = vld [vmem:[#allocation2 + $0x38] sm:$0xf] }
  0xa9   : > { %v346_v23 = vmul.f32 %v345_v32, %v343_v14  ;;  %v366_v32 = vmul.f32 %v363_v26, %v1126_v1 }
  0xaa   : > { %v297_v58 = vadd.f32 %v296_v52, %v287_v55  ;;  %v291_v59 = vadd.f32 %v290_v53, %v281_v29 }
  0xac   : > { %v301_v7 = vadd.f32 %v300_v60, %v291_v59  ;;  %v409_v60 = vld [vmem:[#allocation2 + $0x44] sm:$0xf] }
  0xaf   : > { %v309_v33 = vpop.permute.xlu1 %308  ;;  %v305_v34 = vpop.permute.xlu0 %304 }
  0xb0   : > { %v359_v35 = vpop.permute.xlu2 %358  ;;  %v306_v56 = vmul.f32 %v305_v34, %v303_v51  ;;  %v310_v2 = vmul.f32 %v309_v33, %v303_v51  ;;  %v399_v51 = vld [vmem:[#allocation2 + $0x40] sm:$0xf] }
  0xb1   : > { %v360_v34 = vmul.f32 %v359_v35, %v353_v13 }
  0xb2   : > { %v307_v3 = vadd.f32 %v306_v56, %v297_v58  ;;  %v311_v9 = vadd.f32 %v310_v2, %v301_v7  ;;  %v429_v7 = vld [vmem:[#allocation2 + $0x4c] sm:$0xf] }
  0xb4   : > { %v317_v10 = vadd.f32 %v316_v5, %v307_v3  ;;  %v419_v5 = vld [vmem:[#allocation2 + $0x48] sm:$0xf] }
  0xb7   : > { %v325_v36 = vpop.permute.xlu1 %324  ;;  %v319_v37 = vpop.permute.xlu0 %318 }
  0xb8   : > { %v1175_v38 = vpop.permute.xlu2 %380  ;;  %v326_v4 = vmul.f32 %v325_v36, %v323_v61  ;;  %v320_v8 = vmul.f32 %v319_v37, %v313_v57  ;;  %v364_v36 = vmul.f32 %v363_v26, %v1121_v0 }
  0xb9   : > { %v382_v50 = vmul.f32 %v1175_v38, %v379_v45 }
  0xba   : > { %v327_v15 = vadd.f32 %v326_v4, %v317_v10  ;;  %v321_v16 = vadd.f32 %v320_v8, %v311_v9  ;;  %v1024_v8 = vmov 0  }
  0xbb   : > { %882 = vset.pattern.permute.xlu1 %v1024_v8  ;;  %881 = vset.pattern.permute.xlu0 %v1024_v8 }
  0xbc   : > { %v331_v21 = vadd.f32 %v330_v17, %v321_v16  ;;  %v439_v16 = vld [vmem:[#allocation2 + $0x50] sm:$0xf] }
  0xbf   : > { %v339_v39 = vpop.permute.xlu1 %338  ;;  %v335_v40 = vpop.permute.xlu0 %334 }
  0xc0   : > { %v1177_v43 = vpop.permute.xlu2 %394  ;;  %v336_v11 = vmul.f32 %v335_v40, %v333_v6  ;;  %v340_v20 = vmul.f32 %v339_v39, %v333_v6 }
  0xc2   : > { %v337_v22 = vadd.f32 %v336_v11, %v327_v15  ;;  %v341_v27 = vadd.f32 %v340_v20, %v331_v21  ;;  %v1191_v11 = vld [vmem:[%s1257_s4] sm:$0xff]  ;;  %v449_v20 = vld [vmem:[#allocation2 + $0x54] sm:$0xf] }
  0xc3   : > { %494 = vperm.xlu1 %882, %v1191_v11  }
  0xc4   : > { %v347_v29 = vadd.f32 %v346_v23, %v337_v22 }
  0xc7   : > { %v355_v41 = vpop.permute.xlu1 %354  ;;  %v349_v42 = vpop.permute.xlu0 %348 }
  0xc8   : > { %v1179_v54 = vpop.permute.xlu2 %410  ;;  %v356_v24 = vmul.f32 %v355_v41, %v353_v13  ;;  %v350_v25 = vmul.f32 %v349_v42, %v343_v14  ;;  %v389_v41 = vld [vmem:[#allocation2 + $0x3c] sm:$0xf] }
  0xc9   : > { %v396_v3 = vmul.f32 %v1177_v43, %v389_v41  ;;  %v412_v38 = vmul.f32 %v1179_v54, %v409_v60  ;;  %v489_v43 = vld [vmem:[%s1257_s4 + $0x8] sm:$0xff] }
  0xca   : > { %v357_v31 = vadd.f32 %v356_v24, %v347_v29  ;;  %v351_v33 = vadd.f32 %v350_v25, %v341_v27  ;;  %499 = vperm.xlu0 %881, %v489_v43   ;;  %v459_v24 = vld [vmem:[#allocation2 + $0x58] sm:$0xf] }
  0xcc   : > { %v361_v39 = vadd.f32 %v360_v34, %v351_v33  ;;  %v365_v46 = vadd.f32 %v364_v36, %v357_v31  ;;  %v469_v36 = vld [vmem:[#allocation2 + $0x5c] sm:$0xf] }
  0xce   : > { %v367_v52 = vadd.f32 %v366_v32, %v361_v39 }
  0xcf   : > { %v375_v47 = vpop.permute.xlu1 %374  ;;  %v371_v48 = vpop.permute.xlu0 %370 }
  0xd0   : > { %v1181_v12 = vpop.permute.xlu2 %424  ;;  %v372_v44 = vmul.f32 %v371_v48, %v369_v30  ;;  %v376_v42 = vmul.f32 %v375_v47, %v369_v30 }
  0xd2   : > { %v373_v49 = vadd.f32 %v372_v44, %v365_v46  ;;  %v377_v57 = vadd.f32 %v376_v42, %v367_v52  ;;  %v479_v46 = vld [vmem:[#allocation2 + $0x60] sm:$0xf] }
  0xd4   : > { %v383_v58 = vadd.f32 %v382_v50, %v373_v49 }
  0xd7   : > { %v391_v62 = vpop.permute.xlu1 %390  ;;  %v385_v63 = vpop.permute.xlu0 %384 }
  0xd8   : > { %v441_v37 = vpop.permute.xlu2 %440  ;;  %v392_v53 = vmul.f32 %v391_v62, %v389_v41  ;;  %v386_v35 = vmul.f32 %v385_v63, %v379_v45 }
  0xd9   : > { %v442_v21 = vmul.f32 %v441_v37, %v439_v16 }
  0xda   : > { %v393_v61 = vadd.f32 %v392_v53, %v383_v58  ;;  %v387_v2 = vadd.f32 %v386_v35, %v377_v57  ;;  %v491_v58 = vld [vmem:[%s1255_s2 + $0x8] sm:$0xff] }
  0xdc   : > { %v397_v4 = vadd.f32 %v396_v3, %v387_v2 }
  0xdf   : > { %v405_v18 = vpop.permute.xlu1 %404  ;;  %v401_v19 = vpop.permute.xlu0 %400 }
  0xe0   : > { %v402_v59 = vmul.f32 %v401_v19, %v399_v51  ;;  %v455_v48 = vpop.permute.xlu2 %454  ;;  %v406_v47 = vmul.f32 %v405_v18, %v399_v51  ;;  %v426_v18 = vmul.f32 %v1181_v12, %v419_v5 }
  0xe1   : > { %v456_v44 = vmul.f32 %v455_v48, %v449_v20 }
  0xe2   : > { %v403_v6 = vadd.f32 %v402_v59, %v393_v61  ;;  %v407_v14 = vadd.f32 %v406_v47, %v397_v4  ;;  %v1026_v47 = vmov 1  }
  0xe3   : > { %883 = vset.pattern.permute.xlu2 %v1026_v47 }
  0xe4   : > { %v413_v54 = vadd.f32 %v412_v38, %v403_v6  ;;  %596 = vperm.xlu2 %883, %v1191_v11  }
  0xe7   : > { %v421_v28 = vpop.permute.xlu1 %420  ;;  %v415_v40 = vpop.permute.xlu0 %414 }
  0xe8   : > { %v422_v62 = vmul.f32 %v421_v28, %v419_v5  ;;  %v416_v63 = vmul.f32 %v415_v40, %v409_v60  ;;  %v471_v19 = vpop.permute.xlu2 %470  ;;  %v1025_v5 = vmov 2  }
  0xe9   : > { %v472_v39 = vmul.f32 %v471_v19, %v469_v36  ;;  %884 = vset.pattern.permute.xlu1 %v1025_v5 }
  0xea   : > { %v423_v17 = vadd.f32 %v422_v62, %v413_v54  ;;  %v417_v13 = vadd.f32 %v416_v63, %v407_v14  ;;  %660 = vperm.xlu1 %884, %v1191_v11  }
  0xec   : > { %v427_v25 = vadd.f32 %v426_v18, %v417_v13 }
  0xef   : > { %v435_v55 = vpop.permute.xlu1 %434  ;;  %v431_v56 = vpop.permute.xlu0 %430 }
  0xf0   : > { %v432_v15 = vmul.f32 %v431_v56, %v429_v7  ;;  %v436_v22 = vmul.f32 %v435_v55, %v429_v7  ;;  %v485_v32 = vpop.permute.xlu2 %484  ;;  %v490_v56 = vld [vmem:[%s1255_s2] sm:$0xff]  ;;  %v1027_v7 = vmov 3  }
  0xf1   : > { %v486_v49 = vmul.f32 %v485_v32, %v479_v46  ;;  %886 = vset.pattern.permute.xlu0 %v1027_v7  ;;  %885 = vset.pattern.permute.xlu2 %v1027_v7 }
  0xf2   : > { %v433_v23 = vadd.f32 %v432_v15, %v423_v17  ;;  %v437_v31 = vadd.f32 %v436_v22, %v427_v25  ;;  %666 = vperm.xlu2 %885, %v1191_v11  }
  0xf4   : > { %v443_v33 = vadd.f32 %v442_v21, %v433_v23 }
  0xf7   : > { %v451_v9 = vpop.permute.xlu1 %450  ;;  %v445_v10 = vpop.permute.xlu0 %444 }
  0xf8   : > { %v452_v26 = vmul.f32 %v451_v9, %v449_v20  ;;  %v446_v27 = vmul.f32 %v445_v10, %v439_v16 }
  0xfa   : > { %v453_v28 = vadd.f32 %v452_v26, %v443_v33  ;;  %v447_v40 = vadd.f32 %v446_v27, %v437_v31  ;;  %v594_v31 = vld [vmem:[%s1256_s3] sm:$0xf] }
  0xfc   : > { %v457_v41 = vadd.f32 %v456_v44, %v447_v40 }
  0xff   : > { %v465_v29 = vpop.permute.xlu1 %464  ;;  %v461_v30 = vpop.permute.xlu0 %460 }
 0x100   : > { %v462_v34 = vmul.f32 %v461_v30, %v459_v24  ;;  %v466_v45 = vmul.f32 %v465_v29, %v459_v24 }
 0x102   : > { %v463_v12 = vadd.f32 %v462_v34, %v453_v28  ;;  %v467_v50 = vadd.f32 %v466_v45, %v457_v41 }
 0x104   : > { %v473_v51 = vadd.f32 %v472_v39, %v463_v12 }
 0x107   : > { %v481_v37 = vpop.permute.xlu1 %480  ;;  %v475_v42 = vpop.permute.xlu0 %474 }
 0x108   : > { %v482_v52 = vmul.f32 %v481_v37, %v479_v46  ;;  %v476_v53 = vmul.f32 %v475_v42, %v469_v36 }
 0x10a   : > { %v477_v35 = vadd.f32 %v476_v53, %v467_v50  ;;  %v483_v55 = vadd.f32 %v482_v52, %v473_v51 }
 0x10c   : > { %780 = vmatpush.msk.msra.mxu0 %vm509_vm0, %v483_v55  ;;  %v487_v57 = vadd.f32 %v486_v49, %v477_v35 }
 0x10d   : > { %781 = vmatmul.msk.f32.vlgmr.msra.gmra.mxu0 %vm502_vm1, %v490_v56 }
 0x10e   : > { %783 = vmatpush.msk.msra.mxu1 %vm509_vm0, %v487_v57 }
 0x10f   : > { %784 = vmatmul.msk.f32.vlgmr.msra.gmra.mxu1 %vm502_vm1, %v490_v56 }
 0x115   : > { %782 = vmatmul.msk.f32.gmra.mxu0 %vm502_vm1, %v491_v58 }
 0x117   : > { %785 = vmatmul.msk.f32.gmra.mxu1 %vm502_vm1, %v491_v58 }
 0x135   : > { %v495_v59 = vpop.permute.xlu1 %494 }
 0x13c   : > { %v500_v4 = vpop.permute.xlu0 %499 }
 0x13e   : > { %v597_v40 = vpop.permute.xlu2 %596 }
 0x14c   : > { %v667_v58 = vpop.permute.xlu2 %666 }
 0x15c   : > { %v661_v53 = vpop.permute.xlu1 %660 }
 0x18a   : > { %v533_v48 = vpop.f32.mrf.mxu0 }
 0x18b   : > { %v534_v60 = vadd.f32 %v533_v48, %v495_v59 }
 0x18c   : > { %v556_v61 = vpop.f32.mrf.mxu1 }
 0x18d   : > { %v566_v2 = vmin.f32 %v534_v60, 0.0  ;;  %v557_v3 = vadd.f32 %v556_v61, %v495_v59  ;;  %vm562_vm3 = vcmp.gt.f32.partialorder %v534_v60, 0.0 }
 0x18f   : > { %v570_v6 = vmul.f32 1.442695, %v566_v2  ;;  %v567_v38 = vmin.f32 %v557_v3, 0.0  ;;  %vm563_vm5 = vcmp.gt.f32.partialorder %v557_v3, 0.0  ;;  %v676_v2 = vrot.slane %v1126_v1, 4 }
 0x191   : > { %v572_v62 = vmul.f32 1.442695, %v567_v38  ;;  %887 = vpow2.f32 %v570_v6 }
 0x192   : > { %v536_v63 = vpop.f32.mrf.mxu0 }
 0x193   : > { %v537_v8 = vadd.f32 %v536_v63, %v500_v4  ;;  %889 = vpow2.f32 %v572_v62 }
 0x194   : > { %v559_v9 = vpop.f32.mrf.mxu1 }
 0x195   : > { %v568_v10 = vmin.f32 %v537_v8, 0.0  ;;  %v560_v43 = vadd.f32 %v559_v9, %v500_v4  ;;  %vm564_vm2 = vcmp.gt.f32.partialorder %v537_v8, 0.0 }
 0x197   : > { %v574_v14 = vmul.f32 1.442695, %v568_v10  ;;  %v569_v54 = vmin.f32 %v560_v43, 0.0  ;;  %v888_v15 = vpop.eup %887  ;;  %vm565_vm4 = vcmp.gt.f32.partialorder %v560_v43, 0.0 }
 0x198   : > { %v786_v13 = vadd.f32 -1.0, %v888_v15 }
 0x199   : > { %891 = vpow2.f32 %v574_v14  ;;  %v576_v16 = vmul.f32 1.442695, %v569_v54  ;;  %v890_v17 = vpop.eup %889 }
 0x19a   : > { %v787_v18 = vadd.f32 -1.0, %v890_v17  ;;  %v582_v22 = vmul.f32 1.6732632, %v786_v13 }
 0x19b   : > { %893 = vpow2.f32 %v576_v16 }
 0x19c   : > { %v583_v25 = vmul.f32 1.6732632, %v787_v18  ;;  %v586_v27 = vsel %vm562_vm3, %v534_v60, %v582_v22  ;;  %v672_v60 = vrot.slane %v1121_v0, 4 }
 0x19d   : > { %v590_v34 = vmul.f32 1.050701, %v586_v27 }
 0x19e   : > { %v587_v33 = vsel %vm563_vm5, %v557_v3, %v583_v25 }
 0x19f   : > { %v892_v19 = vpop.eup %891  ;;  %v591_v28 = vmul.f32 1.050701, %v587_v33 }
 0x1a0   : > { %v788_v20 = vadd.f32 -1.0, %v892_v19 }
 0x1a1   : > { %v894_v23 = vpop.eup %893 }
 0x1a2   : > { %v584_v21 = vmul.f32 1.6732632, %v788_v20  ;;  %v789_v24 = vadd.f32 -1.0, %v894_v23 }
 0x1a4   : > { %v588_v26 = vsel %vm564_vm2, %v537_v8, %v584_v21  ;;  %v585_v29 = vmul.f32 1.6732632, %v789_v24 }
 0x1a5   : > { %v592_v11 = vmul.f32 1.050701, %v588_v26 }
 0x1a6   : > { %v589_v30 = vsel %vm565_vm4, %v560_v43, %v585_v29 }
 0x1a7   : > { %617 = vmatpush.msra.mxu2 %v592_v11  ;;  %v593_v36 = vmul.f32 1.050701, %v589_v30 }
 0x1a9   : > { %618 = vmatpush.msra.mxu2 %v590_v34  ;;  %637 = vmatpush.msra.mxu3 %v593_v36 }
 0x1aa   : > { %790 = vmatmul.msk.f32.vlgmr.msra.gmra.mxu2 %vm599_vm6, %v594_v31 }
 0x1ab   : > { %638 = vmatpush.msra.mxu3 %v591_v28 }
 0x1ac   : > { %791 = vmatmul.msk.f32.vlgmr.msra.gmra.mxu3 %vm599_vm6, %v594_v31 }
 0x22d   : > { %v620_v44 = vpop.f32.mrf.mxu2 }
 0x22e   : > { %v621_v45 = vadd.f32 %v620_v44, %v597_v40 }
 0x22f   : > { %v640_v12 = vpop.f32.mrf.mxu3 }
 0x230   : > { %v645_v39 = vmin.f32 %v621_v45, 0.0  ;;  %v641_v32 = vadd.f32 %v640_v12, %v597_v40  ;;  %vm643_vm7 = vcmp.gt.f32.partialorder %v621_v45, 0.0 }
 0x232   : > { %v647_v46 = vmul.f32 1.442695, %v645_v39  ;;  %v646_v41 = vmin.f32 %v641_v32, 0.0  ;;  %vm644_vm8 = vcmp.gt.f32.partialorder %v641_v32, 0.0 }
 0x234   : > { %895 = vpow2.f32 %v647_v46  ;;  %v649_v37 = vmul.f32 1.442695, %v646_v41 }
 0x236   : > { %897 = vpow2.f32 %v649_v37 }
 0x23a   : > { %v896_v42 = vpop.eup %895 }
 0x23b   : > { %v792_v49 = vadd.f32 -1.0, %v896_v42 }
 0x23c   : > { %v898_v50 = vpop.eup %897 }
 0x23d   : > { %v793_v51 = vadd.f32 -1.0, %v898_v50  ;;  %v653_v52 = vmul.f32 1.6732632, %v792_v49 }
 0x23f   : > { %v654_v35 = vmul.f32 1.6732632, %v793_v51  ;;  %v655_v55 = vsel %vm643_vm7, %v621_v45, %v653_v52 }
 0x240   : > { %v657_v56 = vmul.f32 1.050701, %v655_v55 }
 0x241   : > { %v656_v57 = vsel %vm644_vm8, %v641_v32, %v654_v35 }
 0x242   : > { %v658_v59 = vmul.f32 1.050701, %v656_v57  ;;  %v663_v48 = vmul.f32 %v661_v53, %v657_v56 }
 0x244   : > { %v664_v61 = vmul.f32 %v661_v53, %v658_v59  ;;  %v669_v3 = vadd.f32 %v667_v58, %v663_v48 }
 0x246   : > { %v670_v5 = vadd.f32 %v667_v58, %v664_v61  ;;  %v674_v47 = vsel %vm509_vm0, %v669_v3, %v672_v60 }
 0x247   : > { %679 = vst [vmem:[%s235_s11] sm:$0xff] %v674_v47 }
 0x248   : > { %v678_v6 = vsel %vm509_vm0, %v670_v5, %v676_v2 }
 0x249   : > { %680 = vst [vmem:[%s235_s11 + $0x8] sm:$0xff] %v678_v6 }
 0x24a   : > { %956 = shalt.err (!%p953_p8)
}
 0x24b   : > { %s1028_s26 = smov 128  }
 0x24c   : > { %804 = dma.vmem_to_hbm [thread:$0]  (%p1097_p5), %s695_s12, 256, %s697_s22, %s682_s13, %s1028_s26, %s1028_s26, %s1004_s30  }
 0x24d PF: > { %p816_p9 = scmp.ge.s32.totalorder %s995_s21, 2  ;;  %s711_s7 = sand.u32 1, %s983_s18  }
 0x24e   : > { %s712_s8 = scalar_lea.sflag [#allocation4], %s711_s7 }
 0x24f   : > { %p811_p10 = pnand %p816_p9, %p1101_p6 }
 0x251   : > { %p812_p11 = pneg %p811_p10 }
 0x253   : > { %978 = dma.done.wait (%p812_p11), %s712_s8, 256  }
 0x254   : > { %980 = vsyncadd (%p812_p11), %s712_s8, 4294967040  ;;  %p16_p12 = scmp.ge.s32.totalorder %s1084_s24, 4   ;;  %s1261_s18 = smov %s987_s19 }
 0x255   : > { %s1262_s19 = smov %s991_s20  ;;  %s1263_s20 = smov %s1095_s27 }
 0x256   : > { %s1264_s21 = smov %s1084_s24  ;;  %18 = sbr.rel (!%p16_p12) target bundleno = 4 (0x4), region = 104 }
 0x25b   :  { %718 = vsyncpa [#allocation3], 1 }
 0x25c   :  { %720 = vsyncpa [#allocation3 + $0x1], 1 }
 0x25d   :  { %721 = vsyncpa [#allocation4], 1 }
 0x25e   :  { %723 = vsyncpa [#allocation4 + $0x1], 1 }

</bundles_post_ra>
